<compile_context>
chip_gen: v7x
topology: tpu7x:2x2x1
jax: 0.10.0
libtpu: 0.0.40
codegen_flags: <defaults>
</compile_context>

<pallas_src>
from functools import partial

import jax
import jax.numpy as jnp
from jax import lax
from jax.experimental import pallas as pl
from jax.experimental.pallas import tpu as pltpu


# ---------------------------------------------------------------------------
# Tiled matmul kernels (K-reduction with f32 VMEM accumulator)
# ---------------------------------------------------------------------------
def _matmul_kernel(x_ref, w_ref, o_ref, acc_ref):
    @pl.when(pl.program_id(2) == 0)
    def _():
        acc_ref[...] = jnp.zeros_like(acc_ref)

    acc_ref[...] += jnp.dot(x_ref[...], w_ref[...],
                            preferred_element_type=jnp.float32)

    @pl.when(pl.program_id(2) == pl.num_programs(2) - 1)
    def _():
        o_ref[...] = acc_ref[...].astype(o_ref.dtype)


def _matmul_bias_kernel(x_ref, w_ref, b_ref, o_ref, acc_ref):
    @pl.when(pl.program_id(2) == 0)
    def _():
        acc_ref[...] = jnp.zeros_like(acc_ref)

    acc_ref[...] += jnp.dot(x_ref[...], w_ref[...],
                            preferred_element_type=jnp.float32)

    @pl.when(pl.program_id(2) == pl.num_programs(2) - 1)
    def _():
        o_ref[...] = (acc_ref[...] + b_ref[...].astype(jnp.float32)
                      ).astype(o_ref.dtype)


def _pick_k_tile(K, pref=512, align=128):
    """Largest tile <= pref that is a multiple of `align` and divides K
    exactly (the K axis is a reduction -> ragged blocks are not allowed).
    Falls back to the full K (full-extent block is always layout-legal)."""
    if K <= pref:
        return K
    t = (pref // align) * align
    while t >= align:
        if K % t == 0:
            return t
        t -= align
    return K


def pallas_matmul(x, w, out_dtype=None, *, tm=512, tn=256, tk=512):
    """out = x @ w, tiled for the MXU with f32 accumulation."""
    M, K = x.shape
    K2, Nw = w.shape
    assert K == K2
    out_dtype = out_dtype or x.dtype
    btm = M if M <= tm else tm          # tm is a multiple of 8
    btn = Nw if Nw <= tn else tn        # tn is a multiple of 128
    btk = _pick_k_tile(K, tk)
    grid = (pl.cdiv(M, btm), pl.cdiv(Nw, btn), K // btk)
    return pl.pallas_call(
        _matmul_kernel,
        out_shape=jax.ShapeDtypeStruct((M, Nw), out_dtype),
        grid=grid,
        in_specs=[
            pl.BlockSpec((btm, btk), lambda i, j, k: (i, k)),
            pl.BlockSpec((btk, btn), lambda i, j, k: (k, j)),
        ],
        out_specs=pl.BlockSpec((btm, btn), lambda i, j, k: (i, j)),
        scratch_shapes=[pltpu.VMEM((btm, btn), jnp.float32)],
        compiler_params=pltpu.CompilerParams(
            dimension_semantics=("parallel", "parallel", "arbitrary")),
    )(x, w)


def pallas_matmul_bias(x, w, b, out_dtype=None, *, tm=512, tn=256, tk=512):
    """out = x @ w + b, tiled for the MXU with f32 accumulation."""
    M, K = x.shape
    K2, Nw = w.shape
    assert K == K2
    out_dtype = out_dtype or x.dtype
    btm = M if M <= tm else tm
    btn = Nw if Nw <= tn else tn
    btk = _pick_k_tile(K, tk)
    grid = (pl.cdiv(M, btm), pl.cdiv(Nw, btn), K // btk)
    b2 = b.reshape(1, Nw)
    return pl.pallas_call(
        _matmul_bias_kernel,
        out_shape=jax.ShapeDtypeStruct((M, Nw), out_dtype),
        grid=grid,
        in_specs=[
            pl.BlockSpec((btm, btk), lambda i, j, k: (i, k)),
            pl.BlockSpec((btk, btn), lambda i, j, k: (k, j)),
            pl.BlockSpec((1, btn), lambda i, j, k: (0, j)),
        ],
        out_specs=pl.BlockSpec((btm, btn), lambda i, j, k: (i, j)),
        scratch_shapes=[pltpu.VMEM((btm, btn), jnp.float32)],
        compiler_params=pltpu.CompilerParams(
            dimension_semantics=("parallel", "parallel", "arbitrary")),
    )(x, w, b2)


# ---------------------------------------------------------------------------
# Attention core
# ---------------------------------------------------------------------------
def _attn_kernel(q_ref, k_ref, v_ref, o_ref, *, scale, head_dim, heads,
                 q_col, k_col, v_col):
    # q_ref: (tq, W_q)   -- query rows of the current q tile
    # k_ref/v_ref: (N, W_kv) -- full key/value rows for this head group
    # o_ref: (tq, heads*head_dim) lane-dense output block.
    #
    # `heads` is the heads-per-group (usually 2 for D=64); each head's result
    # is stored into o_ref as soon as it is produced, so only one head's
    # (tq, N) score tile is meaningfully live at a time and there is no
    # trailing concatenate.
    # TODO(synk): for very long sequences (N >= ~1024) add a KV grid axis with
    # an online-softmax (flash) accumulator to bound the (tq, N) score tile.
    # TODO(synk): MXU-shape micro-opt — stack the two heads of a group so the
    # PV matmul produces 128 output lanes instead of 2x64.
    for h in range(heads):
        qs = q_col + h * head_dim
        ks = k_col + h * head_dim
        vs = v_col + h * head_dim
        q = q_ref[:, qs:qs + head_dim] * scale          # scale folded into q
        k = k_ref[:, ks:ks + head_dim]
        v = v_ref[:, vs:vs + head_dim]
        # q @ k^T contracted on the last axes directly (no materialized k.T)
        s = lax.dot_general(q, k, (((1,), (1,)), ((), ())),
                            preferred_element_type=jnp.float32)
        # stable softmax, strictly in f32
        s = s - jnp.max(s, axis=-1, keepdims=True)
        p = jnp.exp(s)
        denom = jnp.sum(p, axis=-1, keepdims=True)
        o = jnp.dot(p.astype(v.dtype), v, preferred_element_type=jnp.float32)
        # normalize the (tq, D) result instead of the (tq, N) probabilities;
        # approx reciprocal runs on the EUP (~1e-3 rel err, fine for parity).
        o = o * pl.reciprocal(denom, approx=True)
        o_ref[:, h * head_dim:(h + 1) * head_dim] = o.astype(o_ref.dtype)


def _heads_per_group(num_heads, head_dim):
    """Smallest number of whole heads whose combined width is a multiple of
    128 lanes.  Returns None when C is not a multiple of 128 (small-C
    fallback path)."""
    C = num_heads * head_dim
    if C % 128 != 0:
        return None
    for g in range(1, num_heads + 1):
        if num_heads % g == 0 and (g * head_dim) % 128 == 0:
            return g
    return None


def pallas_attention(qkv, scale, num_heads, head_dim, out_dtype, *, q_tile=256):
    """qkv: (B, N, 3*C) contiguous (q | k | v along the last axis, heads
    nested inside each).  Returns (B, N, C) with heads already merged."""
    B, N, threeC = qkv.shape
    C = num_heads * head_dim
    assert threeC == 3 * C

    tq = N if N <= q_tile else q_tile           # q_tile is a multiple of 8
    gq = pl.cdiv(N, tq)

    hpg = _heads_per_group(num_heads, head_dim)
    if hpg is None:
        # Small-C fallback: full lane-dense (.., 3C) blocks, static column
        # views inside the kernel select q/k/v.
        heads_k = num_heads
        q_w = kv_w = 3 * C
        out_w = C
        n_groups = 1
        cols = (0, C, 2 * C)
        in_specs = [
            pl.BlockSpec((None, tq, 3 * C), lambda b, g, i: (b, i, 0)),
            pl.BlockSpec((None, N, 3 * C), lambda b, g, i: (b, 0, 0)),
            pl.BlockSpec((None, N, 3 * C), lambda b, g, i: (b, 0, 0)),
        ]
    else:
        # Head-group path: each block is exactly one group's columns
        # (width = hpg*head_dim, a multiple of 128 lanes).
        heads_k = hpg
        gw = hpg * head_dim
        q_w = kv_w = out_w = gw
        n_groups = C // gw
        ng = n_groups
        cols = (0, 0, 0)
        in_specs = [
            pl.BlockSpec((None, tq, gw), lambda b, g, i: (b, i, g)),
            pl.BlockSpec((None, N, gw), lambda b, g, i, ng=ng: (b, 0, ng + g)),
            pl.BlockSpec((None, N, gw),
                         lambda b, g, i, ng=ng: (b, 0, 2 * ng + g)),
        ]

    out_spec = pl.BlockSpec((None, tq, out_w), lambda b, g, i: (b, i, g))
    grid = (B, n_groups, gq)      # q-tile axis last -> k/v blocks are reused

    # VMEM budget for the double-buffered pipeline + per-head f32 score tile,
    # clamped to stay inside every generation's physical VMEM (v7x: 64 MiB).
    isz = jnp.dtype(qkv.dtype).itemsize
    osz = jnp.dtype(out_dtype).itemsize
    need = (2 * (tq * q_w * isz + 2 * N * kv_w * isz + tq * out_w * osz)
            + 2 * tq * N * 4)
    vmem_limit = int(min(64 * 2**20, max(32 * 2**20, 2 * need)))

    kernel = partial(_attn_kernel, scale=scale, head_dim=head_dim,
                     heads=heads_k, q_col=cols[0], k_col=cols[1],
                     v_col=cols[2])
    return pl.pallas_call(
        kernel,
        out_shape=jax.ShapeDtypeStruct((B, N, C), out_dtype),
        grid=grid,
        in_specs=in_specs,
        out_specs=out_spec,
        compiler_params=pltpu.CompilerParams(
            dimension_semantics=("parallel", "parallel", "parallel"),
            vmem_limit_bytes=vmem_limit),
    )(qkv, qkv, qkv)


# ---------------------------------------------------------------------------
# Full module forward (default config: no qkv bias, no qk_norm, eval mode)
# ---------------------------------------------------------------------------
def attention_forward(x, w_qkv_t, w_proj_t, b_proj, num_heads,
                      compute_dtype=None):
    """Equivalent of Attention.forward(x) with default config (eval mode).

    w_qkv_t: (C, 3C)  pre-transposed qkv weight (hoisted out of the hot path).
    w_proj_t: (C, C)  pre-transposed proj weight.
    compute_dtype: pass jnp.bfloat16 on v5e/v6e/v7x to feed the MXU bf16
    operands (accumulation and softmax stay f32); pre-cast the weights
    outside jit in that case to avoid a per-call cast.
    """
    B, N, C = x.shape
    head_dim = C // num_heads
    scale = head_dim ** (-0.5)
    out_dtype = x.dtype
    cdt = compute_dtype or x.dtype

    xc = x.astype(cdt).reshape(B * N, C)
    wq = w_qkv_t if w_qkv_t.dtype == cdt else w_qkv_t.astype(cdt)
    wp = w_proj_t if w_proj_t.dtype == cdt else w_proj_t.astype(cdt)

    # qkv = x @ W_qkv^T   (no bias: qkv_bias=False)
    qkv = pallas_matmul(xc, wq, out_dtype=cdt)              # (B*N, 3C)
    # Free reshape: (B, N, 3C) is the natural memory order; q/k/v and head
    # selection happen through BlockSpec index maps / static ref views.
    qkv = qkv.reshape(B, N, 3 * C)

    o = pallas_attention(qkv, scale, num_heads, head_dim, cdt)   # (B, N, C)

    # heads already merged lane-dense -> project
    out = pallas_matmul_bias(o.reshape(B * N, C), wp, b_proj,
                             out_dtype=out_dtype)           # (B*N, C)
    return out.reshape(B, N, C)


# ---------------------------------------------------------------------------
# Pure-JAX reference (for correctness check)
# ---------------------------------------------------------------------------
def _reference(x, w_qkv_t, w_proj_t, b_proj, num_heads):
    B, N, C = x.shape
    D = C // num_heads
    qkv = (x @ w_qkv_t).reshape(B, N, 3, num_heads, D).transpose(2, 0, 3, 1, 4)
    q, k, v = qkv[0], qkv[1], qkv[2]
    q = q * (D ** -0.5)
    attn = jnp.einsum("bhqd,bhkd->bhqk", q, k)
    attn = jax.nn.softmax(attn, axis=-1)
    o = jnp.einsum("bhqk,bhkd->bhqd", attn, v)
    o = o.transpose(0, 2, 1, 3).reshape(B, N, C)
    return o @ w_proj_t + b_proj


# ---------------------------------------------------------------------------
# Main
# ---------------------------------------------------------------------------
if __name__ == "__main__":
    B, N, C = 2, 8, 32
    num_heads = 4  # head_dim = 8

    key = jax.random.PRNGKey(0)
    kx, kqkv, kp, kpb = jax.random.split(key, 4)

    x = jax.random.normal(kx, (B, N, C), dtype=jnp.float32)
    # PyTorch nn.Linear weight layout: (out_features, in_features)
    w_qkv = 0.02 * jax.random.normal(kqkv, (3 * C, C), dtype=jnp.float32)
    w_proj = 0.02 * jax.random.normal(kp, (C, C), dtype=jnp.float32)
    b_proj = 0.02 * jax.random.normal(kpb, (C,), dtype=jnp.float32)

    # Hoist the weight transpose out of the per-call path (done once).
    w_qkv_t = w_qkv.T
    w_proj_t = w_proj.T

    fwd = jax.jit(partial(attention_forward, num_heads=num_heads))
    out = fwd(x, w_qkv_t, w_proj_t, b_proj)
    jax.block_until_ready(out)
    assert out.shape == (B, N, C)

    ref = _reference(x, w_qkv_t, w_proj_t, b_proj, num_heads)
    max_err = float(jnp.max(jnp.abs(out - ref)))
    assert jnp.allclose(out, ref, rtol=5e-2, atol=5e-3), max_err

    print("KERNEL_OK")
</pallas_src>

<mosaic_0001>
module attributes {stable_mosaic.version = 11 : i64} {
  func.func @_matmul_kernel(%arg0: i32, %arg1: i32, %arg2: i32, %arg3: memref<16x32xf32, #tpu.memory_space<vmem>>, %arg4: memref<32x96xf32, #tpu.memory_space<vmem>>, %arg5: memref<16x96xf32, #tpu.memory_space<vmem>>, %arg6: memref<16x96xf32, #tpu.memory_space<vmem>>) attributes {dimension_semantics = [#tpu.dimension_semantics<parallel>, #tpu.dimension_semantics<parallel>, #tpu.dimension_semantics<arbitrary>], iteration_bounds = array<i64: 1, 1, 1>, scalar_prefetch = 0 : i64, scratch_operands = 1 : i64, tpu.core_type = #tpu.core_type<tc>, window_params = [{transform_indices = @transform_0, window_bounds = array<i64: 16, 32>}, {transform_indices = @transform_1, window_bounds = array<i64: 32, 96>}, {transform_indices = @transform_2, window_bounds = array<i64: 16, 96>}]} {
    %c0_i32 = arith.constant 0 : i32
    %0 = arith.cmpi eq, %arg2, %c0_i32 : i32
    %1 = arith.extui %0 : i1 to i32
    %c0_i32_0 = arith.constant 0 : i32
    %2 = arith.cmpi ne, %1, %c0_i32_0 : i32
    scf.if %2 {
      %cst_10 = arith.constant 0.000000e+00 : f32
      %12 = vector.broadcast %cst_10 : f32 to vector<16x96xf32>
      %c0_11 = arith.constant 0 : index
      %c0_12 = arith.constant 0 : index
      %13 = vector.load %arg6[%c0_11, %c0_12] : memref<16x96xf32, #tpu.memory_space<vmem>>, vector<16x96xf32>
      tpu.vector_store %arg6[%c0_11, %c0_12], %12 {strides = array<i32>} : memref<16x96xf32, #tpu.memory_space<vmem>>, vector<16x96xf32>,
    } else {
    }
    %c0 = arith.constant 0 : index
    %c0_1 = arith.constant 0 : index
    %3 = vector.load %arg6[%c0, %c0_1] : memref<16x96xf32, #tpu.memory_space<vmem>>, vector<16x96xf32>
    %c0_2 = arith.constant 0 : index
    %c0_3 = arith.constant 0 : index
    %4 = vector.load %arg3[%c0_2, %c0_3] : memref<16x32xf32, #tpu.memory_space<vmem>>, vector<16x32xf32>
    %c0_4 = arith.constant 0 : index
    %c0_5 = arith.constant 0 : index
    %5 = vector.load %arg4[%c0_4, %c0_5] : memref<32x96xf32, #tpu.memory_space<vmem>>, vector<32x96xf32>
    %cst = arith.constant dense<0.000000e+00> : vector<16x96xf32>
    %6 = tpu.matmul %4, %5, %cst {dimension_numbers = #tpu.dot_dimension_numbers<[1], [0], [0], [1], [0, 0, 1, 1], [], []>} : vector<16x32xf32>, vector<32x96xf32>, vector<16x96xf32> -> vector<16x96xf32>
    %7 = arith.addf %3, %6 : vector<16x96xf32>
    %c0_6 = arith.constant 0 : index
    %c0_7 = arith.constant 0 : index
    %8 = vector.load %arg6[%c0_6, %c0_7] : memref<16x96xf32, #tpu.memory_space<vmem>>, vector<16x96xf32>
    tpu.vector_store %arg6[%c0_6, %c0_7], %7 {strides = array<i32>} : memref<16x96xf32, #tpu.memory_space<vmem>>, vector<16x96xf32>,
    %c0_i32_8 = arith.constant 0 : i32
    %9 = arith.cmpi eq, %arg2, %c0_i32_8 : i32
    %10 = arith.extui %9 : i1 to i32
    %c0_i32_9 = arith.constant 0 : i32
    %11 = arith.cmpi ne, %10, %c0_i32_9 : i32
    scf.if %11 {
      %c0_10 = arith.constant 0 : index
      %c0_11 = arith.constant 0 : index
      %12 = vector.load %arg6[%c0_10, %c0_11] : memref<16x96xf32, #tpu.memory_space<vmem>>, vector<16x96xf32>
      %c0_12 = arith.constant 0 : index
      %c0_13 = arith.constant 0 : index
      %13 = vector.load %arg5[%c0_12, %c0_13] : memref<16x96xf32, #tpu.memory_space<vmem>>, vector<16x96xf32>
      tpu.vector_store %arg5[%c0_12, %c0_13], %12 {strides = array<i32>} : memref<16x96xf32, #tpu.memory_space<vmem>>, vector<16x96xf32>,
    } else {
    }
    return
  }
  func.func @transform_0(%arg0: i32, %arg1: i32, %arg2: i32) -> (i32, i32) {
    %c0_i32 = arith.constant 0 : i32
    return %arg0, %arg2 : i32, i32
  }
  func.func @transform_1(%arg0: i32, %arg1: i32, %arg2: i32) -> (i32, i32) {
    %c0_i32 = arith.constant 0 : i32
    return %arg2, %arg1 : i32, i32
  }
  func.func @transform_2(%arg0: i32, %arg1: i32, %arg2: i32) -> (i32, i32) {
    %c0_i32 = arith.constant 0 : i32
    return %arg0, %arg1 : i32, i32
  }
}

module attributes {stable_mosaic.version = 11 : i64} {
  func.func @_matmul_bias_kernel(%arg0: i32, %arg1: i32, %arg2: i32, %arg3: memref<16x32xf32, #tpu.memory_space<vmem>>, %arg4: memref<32x32xf32, #tpu.memory_space<vmem>>, %arg5: memref<1x32xf32, #tpu.memory_space<vmem>>, %arg6: memref<16x32xf32, #tpu.memory_space<vmem>>, %arg7: memref<16x32xf32, #tpu.memory_space<vmem>>) attributes {dimension_semantics = [#tpu.dimension_semantics<parallel>, #tpu.dimension_semantics<parallel>, #tpu.dimension_semantics<arbitrary>], iteration_bounds = array<i64: 1, 1, 1>, scalar_prefetch = 0 : i64, scratch_operands = 1 : i64, tpu.core_type = #tpu.core_type<tc>, window_params = [{transform_indices = @transform_0, window_bounds = array<i64: 16, 32>}, {transform_indices = @transform_1, window_bounds = array<i64: 32, 32>}, {transform_indices = @transform_2, window_bounds = array<i64: 1, 32>}, {transform_indices = @transform_3, window_bounds = array<i64: 16, 32>}]} {
    %c0_i32 = arith.constant 0 : i32
    %0 = arith.cmpi eq, %arg2, %c0_i32 : i32
    %1 = arith.extui %0 : i1 to i32
    %c0_i32_0 = arith.constant 0 : i32
    %2 = arith.cmpi ne, %1, %c0_i32_0 : i32
    scf.if %2 {
      %cst_10 = arith.constant 0.000000e+00 : f32
      %12 = vector.broadcast %cst_10 : f32 to vector<16x32xf32>
      %c0_11 = arith.constant 0 : index
      %c0_12 = arith.constant 0 : index
      %13 = vector.load %arg7[%c0_11, %c0_12] : memref<16x32xf32, #tpu.memory_space<vmem>>, vector<16x32xf32>
      tpu.vector_store %arg7[%c0_11, %c0_12], %12 {strides = array<i32>} : memref<16x32xf32, #tpu.memory_space<vmem>>, vector<16x32xf32>,
    } else {
    }
    %c0 = arith.constant 0 : index
    %c0_1 = arith.constant 0 : index
    %3 = vector.load %arg7[%c0, %c0_1] : memref<16x32xf32, #tpu.memory_space<vmem>>, vector<16x32xf32>
    %c0_2 = arith.constant 0 : index
    %c0_3 = arith.constant 0 : index
    %4 = vector.load %arg3[%c0_2, %c0_3] : memref<16x32xf32, #tpu.memory_space<vmem>>, vector<16x32xf32>
    %c0_4 = arith.constant 0 : index
    %c0_5 = arith.constant 0 : index
    %5 = vector.load %arg4[%c0_4, %c0_5] : memref<32x32xf32, #tpu.memory_space<vmem>>, vector<32x32xf32>
    %cst = arith.constant dense<0.000000e+00> : vector<16x32xf32>
    %6 = tpu.matmul %4, %5, %cst {dimension_numbers = #tpu.dot_dimension_numbers<[1], [0], [0], [1], [0, 0, 1, 1], [], []>} : vector<16x32xf32>, vector<32x32xf32>, vector<16x32xf32> -> vector<16x32xf32>
    %7 = arith.addf %3, %6 : vector<16x32xf32>
    %c0_6 = arith.constant 0 : index
    %c0_7 = arith.constant 0 : index
    %8 = vector.load %arg7[%c0_6, %c0_7] : memref<16x32xf32, #tpu.memory_space<vmem>>, vector<16x32xf32>
    tpu.vector_store %arg7[%c0_6, %c0_7], %7 {strides = array<i32>} : memref<16x32xf32, #tpu.memory_space<vmem>>, vector<16x32xf32>,
    %c0_i32_8 = arith.constant 0 : i32
    %9 = arith.cmpi eq, %arg2, %c0_i32_8 : i32
    %10 = arith.extui %9 : i1 to i32
    %c0_i32_9 = arith.constant 0 : i32
    %11 = arith.cmpi ne, %10, %c0_i32_9 : i32
    scf.if %11 {
      %c0_10 = arith.constant 0 : index
      %c0_11 = arith.constant 0 : index
      %12 = vector.load %arg7[%c0_10, %c0_11] : memref<16x32xf32, #tpu.memory_space<vmem>>, vector<16x32xf32>
      %c0_12 = arith.constant 0 : index
      %c0_13 = arith.constant 0 : index
      %13 = vector.load %arg5[%c0_12, %c0_13] : memref<1x32xf32, #tpu.memory_space<vmem>>, vector<1x32xf32>
      %14 = vector.broadcast %13 : vector<1x32xf32> to vector<16x32xf32>
      %15 = arith.addf %12, %14 : vector<16x32xf32>
      %c0_14 = arith.constant 0 : index
      %c0_15 = arith.constant 0 : index
      %16 = vector.load %arg6[%c0_14, %c0_15] : memref<16x32xf32, #tpu.memory_space<vmem>>, vector<16x32xf32>
      tpu.vector_store %arg6[%c0_14, %c0_15], %15 {strides = array<i32>} : memref<16x32xf32, #tpu.memory_space<vmem>>, vector<16x32xf32>,
    } else {
    }
    return
  }
  func.func @transform_0(%arg0: i32, %arg1: i32, %arg2: i32) -> (i32, i32) {
    %c0_i32 = arith.constant 0 : i32
    return %arg0, %arg2 : i32, i32
  }
  func.func @transform_1(%arg0: i32, %arg1: i32, %arg2: i32) -> (i32, i32) {
    %c0_i32 = arith.constant 0 : i32
    return %arg2, %arg1 : i32, i32
  }
  func.func @transform_2(%arg0: i32, %arg1: i32, %arg2: i32) -> (i32, i32) {
    %c0_i32 = arith.constant 0 : i32
    %c0_i32_0 = arith.constant 0 : i32
    return %c0_i32, %arg1 : i32, i32
  }
  func.func @transform_3(%arg0: i32, %arg1: i32, %arg2: i32) -> (i32, i32) {
    %c0_i32 = arith.constant 0 : i32
    return %arg0, %arg1 : i32, i32
  }
}

module attributes {stable_mosaic.version = 11 : i64} {
  func.func @_attn_kernel(%arg0: i32, %arg1: i32, %arg2: i32, %arg3: memref<1x8x96xf32, #tpu.memory_space<vmem>>, %arg4: memref<1x8x96xf32, #tpu.memory_space<vmem>>, %arg5: memref<1x8x96xf32, #tpu.memory_space<vmem>>, %arg6: memref<1x8x32xf32, #tpu.memory_space<vmem>>) attributes {dimension_semantics = [#tpu.dimension_semantics<parallel>, #tpu.dimension_semantics<parallel>, #tpu.dimension_semantics<parallel>], iteration_bounds = array<i64: 2, 1, 1>, scalar_prefetch = 0 : i64, scratch_operands = 0 : i64, tpu.core_type = #tpu.core_type<tc>, window_params = [{transform_indices = @transform_0, window_bounds = array<i64: 1, 8, 96>}, {transform_indices = @transform_1, window_bounds = array<i64: 1, 8, 96>}, {transform_indices = @transform_2, window_bounds = array<i64: 1, 8, 96>}, {transform_indices = @transform_3, window_bounds = array<i64: 1, 8, 32>}]} {
    %c0 = arith.constant 0 : index
    %c0_0 = arith.constant 0 : index
    %c0_1 = arith.constant 0 : index
    %0 = vector.load %arg3[%c0, %c0_0, %c0_1] : memref<1x8x96xf32, #tpu.memory_space<vmem>>, vector<1x8x8xf32>
    %1 = vector.shape_cast %0 : vector<1x8x8xf32> to vector<8x8xf32>
    %cst = arith.constant 0.353553385 : f32
    %2 = vector.broadcast %cst : f32 to vector<8x8xf32>
    %3 = arith.mulf %1, %2 : vector<8x8xf32>
    %c0_2 = arith.constant 0 : index
    %c0_3 = arith.constant 0 : index
    %c32 = arith.constant 32 : index
    %4 = vector.load %arg4[%c0_2, %c0_3, %c32] : memref<1x8x96xf32, #tpu.memory_space<vmem>>, vector<1x8x8xf32>
    %5 = vector.shape_cast %4 : vector<1x8x8xf32> to vector<8x8xf32>
    %c0_4 = arith.constant 0 : index
    %c0_5 = arith.constant 0 : index
    %c64 = arith.constant 64 : index
    %6 = vector.load %arg5[%c0_4, %c0_5, %c64] : memref<1x8x96xf32, #tpu.memory_space<vmem>>, vector<1x8x8xf32>
    %7 = vector.shape_cast %6 : vector<1x8x8xf32> to vector<8x8xf32>
    %cst_6 = arith.constant dense<0.000000e+00> : vector<8x8xf32>
    %8 = tpu.matmul %3, %5, %cst_6 {dimension_numbers = #tpu.dot_dimension_numbers<[1], [1], [0], [0], [0, 0, 1, 0], [], []>} : vector<8x8xf32>, vector<8x8xf32>, vector<8x8xf32> -> vector<8x8xf32>
    %cst_7 = arith.constant dense<0xFF800000> : vector<8xf32>
    %9 = vector.multi_reduction <maximumf>, %8, %cst_7 [1] : vector<8x8xf32> to vector<8xf32>
    %10 = vector.shape_cast %9 : vector<8xf32> to vector<8x1xf32>
    %11 = vector.broadcast %10 : vector<8x1xf32> to vector<8x8xf32>
    %12 = arith.subf %8, %11 : vector<8x8xf32>
    %13 = math.exp %12 : vector<8x8xf32>
    %cst_8 = arith.constant dense<0.000000e+00> : vector<8xf32>
    %14 = vector.multi_reduction <add>, %13, %cst_8 [1] : vector<8x8xf32> to vector<8xf32>
    %15 = vector.shape_cast %14 : vector<8xf32> to vector<8x1xf32>
    %cst_9 = arith.constant dense<0.000000e+00> : vector<8x8xf32>
    %16 = tpu.matmul %13, %7, %cst_9 {dimension_numbers = #tpu.dot_dimension_numbers<[1], [0], [0], [1], [0, 0, 1, 1], [], []>} : vector<8x8xf32>, vector<8x8xf32>, vector<8x8xf32> -> vector<8x8xf32>
    %17 = tpu.reciprocal %15 {approx = true} : vector<8x1xf32> -> vector<8x1xf32>
    %18 = vector.broadcast %17 : vector<8x1xf32> to vector<8x8xf32>
    %19 = arith.mulf %16, %18 : vector<8x8xf32>
    %c0_10 = arith.constant 0 : index
    %c0_11 = arith.constant 0 : index
    %c0_12 = arith.constant 0 : index
    %20 = vector.load %arg6[%c0_10, %c0_11, %c0_12] : memref<1x8x32xf32, #tpu.memory_space<vmem>>, vector<1x8x8xf32>
    %21 = vector.shape_cast %20 : vector<1x8x8xf32> to vector<8x8xf32>
    %22 = vector.shape_cast %19 : vector<8x8xf32> to vector<1x8x8xf32>
    tpu.vector_store %arg6[%c0_10, %c0_11, %c0_12], %22 {strides = array<i32>} : memref<1x8x32xf32, #tpu.memory_space<vmem>>, vector<1x8x8xf32>,
    %c0_13 = arith.constant 0 : index
    %c0_14 = arith.constant 0 : index
    %c8 = arith.constant 8 : index
    %23 = vector.load %arg3[%c0_13, %c0_14, %c8] : memref<1x8x96xf32, #tpu.memory_space<vmem>>, vector<1x8x8xf32>
    %24 = vector.shape_cast %23 : vector<1x8x8xf32> to vector<8x8xf32>
    %cst_15 = arith.constant 0.353553385 : f32
    %25 = vector.broadcast %cst_15 : f32 to vector<8x8xf32>
    %26 = arith.mulf %24, %25 : vector<8x8xf32>
    %c0_16 = arith.constant 0 : index
    %c0_17 = arith.constant 0 : index
    %c40 = arith.constant 40 : index
    %27 = vector.load %arg4[%c0_16, %c0_17, %c40] : memref<1x8x96xf32, #tpu.memory_space<vmem>>, vector<1x8x8xf32>
    %28 = vector.shape_cast %27 : vector<1x8x8xf32> to vector<8x8xf32>
    %c0_18 = arith.constant 0 : index
    %c0_19 = arith.constant 0 : index
    %c72 = arith.constant 72 : index
    %29 = vector.load %arg5[%c0_18, %c0_19, %c72] : memref<1x8x96xf32, #tpu.memory_space<vmem>>, vector<1x8x8xf32>
    %30 = vector.shape_cast %29 : vector<1x8x8xf32> to vector<8x8xf32>
    %cst_20 = arith.constant dense<0.000000e+00> : vector<8x8xf32>
    %31 = tpu.matmul %26, %28, %cst_20 {dimension_numbers = #tpu.dot_dimension_numbers<[1], [1], [0], [0], [0, 0, 1, 0], [], []>} : vector<8x8xf32>, vector<8x8xf32>, vector<8x8xf32> -> vector<8x8xf32>
    %cst_21 = arith.constant dense<0xFF800000> : vector<8xf32>
    %32 = vector.multi_reduction <maximumf>, %31, %cst_21 [1] : vector<8x8xf32> to vector<8xf32>
    %33 = vector.shape_cast %32 : vector<8xf32> to vector<8x1xf32>
    %34 = vector.broadcast %33 : vector<8x1xf32> to vector<8x8xf32>
    %35 = arith.subf %31, %34 : vector<8x8xf32>
    %36 = math.exp %35 : vector<8x8xf32>
    %cst_22 = arith.constant dense<0.000000e+00> : vector<8xf32>
    %37 = vector.multi_reduction <add>, %36, %cst_22 [1] : vector<8x8xf32> to vector<8xf32>
    %38 = vector.shape_cast %37 : vector<8xf32> to vector<8x1xf32>
    %cst_23 = arith.constant dense<0.000000e+00> : vector<8x8xf32>
    %39 = tpu.matmul %36, %30, %cst_23 {dimension_numbers = #tpu.dot_dimension_numbers<[1], [0], [0], [1], [0, 0, 1, 1], [], []>} : vector<8x8xf32>, vector<8x8xf32>, vector<8x8xf32> -> vector<8x8xf32>
    %40 = tpu.reciprocal %38 {approx = true} : vector<8x1xf32> -> vector<8x1xf32>
    %41 = vector.broadcast %40 : vector<8x1xf32> to vector<8x8xf32>
    %42 = arith.mulf %39, %41 : vector<8x8xf32>
    %c0_24 = arith.constant 0 : index
    %c0_25 = arith.constant 0 : index
    %c8_26 = arith.constant 8 : index
    %43 = vector.load %arg6[%c0_24, %c0_25, %c8_26] : memref<1x8x32xf32, #tpu.memory_space<vmem>>, vector<1x8x8xf32>
    %44 = vector.shape_cast %43 : vector<1x8x8xf32> to vector<8x8xf32>
    %45 = vector.shape_cast %42 : vector<8x8xf32> to vector<1x8x8xf32>
    tpu.vector_store %arg6[%c0_24, %c0_25, %c8_26], %45 {strides = array<i32>} : memref<1x8x32xf32, #tpu.memory_space<vmem>>, vector<1x8x8xf32>,
    %c0_27 = arith.constant 0 : index
    %c0_28 = arith.constant 0 : index
    %c16 = arith.constant 16 : index
    %46 = vector.load %arg3[%c0_27, %c0_28, %c16] : memref<1x8x96xf32, #tpu.memory_space<vmem>>, vector<1x8x8xf32>
    %47 = vector.shape_cast %46 : vector<1x8x8xf32> to vector<8x8xf32>
    %cst_29 = arith.constant 0.353553385 : f32
    %48 = vector.broadcast %cst_29 : f32 to vector<8x8xf32>
    %49 = arith.mulf %47, %48 : vector<8x8xf32>
    %c0_30 = arith.constant 0 : index
    %c0_31 = arith.constant 0 : index
    %c48 = arith.constant 48 : index
    %50 = vector.load %arg4[%c0_30, %c0_31, %c48] : memref<1x8x96xf32, #tpu.memory_space<vmem>>, vector<1x8x8xf32>
    %51 = vector.shape_cast %50 : vector<1x8x8xf32> to vector<8x8xf32>
    %c0_32 = arith.constant 0 : index
    %c0_33 = arith.constant 0 : index
    %c80 = arith.constant 80 : index
    %52 = vector.load %arg5[%c0_32, %c0_33, %c80] : memref<1x8x96xf32, #tpu.memory_space<vmem>>, vector<1x8x8xf32>
    %53 = vector.shape_cast %52 : vector<1x8x8xf32> to vector<8x8xf32>
    %cst_34 = arith.constant dense<0.000000e+00> : vector<8x8xf32>
    %54 = tpu.matmul %49, %51, %cst_34 {dimension_numbers = #tpu.dot_dimension_numbers<[1], [1], [0], [0], [0, 0, 1, 0], [], []>} : vector<8x8xf32>, vector<8x8xf32>, vector<8x8xf32> -> vector<8x8xf32>
    %cst_35 = arith.constant dense<0xFF800000> : vector<8xf32>
    %55 = vector.multi_reduction <maximumf>, %54, %cst_35 [1] : vector<8x8xf32> to vector<8xf32>
    %56 = vector.shape_cast %55 : vector<8xf32> to vector<8x1xf32>
    %57 = vector.broadcast %56 : vector<8x1xf32> to vector<8x8xf32>
    %58 = arith.subf %54, %57 : vector<8x8xf32>
    %59 = math.exp %58 : vector<8x8xf32>
    %cst_36 = arith.constant dense<0.000000e+00> : vector<8xf32>
    %60 = vector.multi_reduction <add>, %59, %cst_36 [1] : vector<8x8xf32> to vector<8xf32>
    %61 = vector.shape_cast %60 : vector<8xf32> to vector<8x1xf32>
    %cst_37 = arith.constant dense<0.000000e+00> : vector<8x8xf32>
    %62 = tpu.matmul %59, %53, %cst_37 {dimension_numbers = #tpu.dot_dimension_numbers<[1], [0], [0], [1], [0, 0, 1, 1], [], []>} : vector<8x8xf32>, vector<8x8xf32>, vector<8x8xf32> -> vector<8x8xf32>
    %63 = tpu.reciprocal %61 {approx = true} : vector<8x1xf32> -> vector<8x1xf32>
    %64 = vector.broadcast %63 : vector<8x1xf32> to vector<8x8xf32>
    %65 = arith.mulf %62, %64 : vector<8x8xf32>
    %c0_38 = arith.constant 0 : index
    %c0_39 = arith.constant 0 : index
    %c16_40 = arith.constant 16 : index
    %66 = vector.load %arg6[%c0_38, %c0_39, %c16_40] : memref<1x8x32xf32, #tpu.memory_space<vmem>>, vector<1x8x8xf32>
    %67 = vector.shape_cast %66 : vector<1x8x8xf32> to vector<8x8xf32>
    %68 = vector.shape_cast %65 : vector<8x8xf32> to vector<1x8x8xf32>
    tpu.vector_store %arg6[%c0_38, %c0_39, %c16_40], %68 {strides = array<i32>} : memref<1x8x32xf32, #tpu.memory_space<vmem>>, vector<1x8x8xf32>,
    %c0_41 = arith.constant 0 : index
    %c0_42 = arith.constant 0 : index
    %c24 = arith.constant 24 : index
    %69 = vector.load %arg3[%c0_41, %c0_42, %c24] : memref<1x8x96xf32, #tpu.memory_space<vmem>>, vector<1x8x8xf32>
    %70 = vector.shape_cast %69 : vector<1x8x8xf32> to vector<8x8xf32>
    %cst_43 = arith.constant 0.353553385 : f32
    %71 = vector.broadcast %cst_43 : f32 to vector<8x8xf32>
    %72 = arith.mulf %70, %71 : vector<8x8xf32>
    %c0_44 = arith.constant 0 : index
    %c0_45 = arith.constant 0 : index
    %c56 = arith.constant 56 : index
    %73 = vector.load %arg4[%c0_44, %c0_45, %c56] : memref<1x8x96xf32, #tpu.memory_space<vmem>>, vector<1x8x8xf32>
    %74 = vector.shape_cast %73 : vector<1x8x8xf32> to vector<8x8xf32>
    %c0_46 = arith.constant 0 : index
    %c0_47 = arith.constant 0 : index
    %c88 = arith.constant 88 : index
    %75 = vector.load %arg5[%c0_46, %c0_47, %c88] : memref<1x8x96xf32, #tpu.memory_space<vmem>>, vector<1x8x8xf32>
    %76 = vector.shape_cast %75 : vector<1x8x8xf32> to vector<8x8xf32>
    %cst_48 = arith.constant dense<0.000000e+00> : vector<8x8xf32>
    %77 = tpu.matmul %72, %74, %cst_48 {dimension_numbers = #tpu.dot_dimension_numbers<[1], [1], [0], [0], [0, 0, 1, 0], [], []>} : vector<8x8xf32>, vector<8x8xf32>, vector<8x8xf32> -> vector<8x8xf32>
    %cst_49 = arith.constant dense<0xFF800000> : vector<8xf32>
    %78 = vector.multi_reduction <maximumf>, %77, %cst_49 [1] : vector<8x8xf32> to vector<8xf32>
    %79 = vector.shape_cast %78 : vector<8xf32> to vector<8x1xf32>
    %80 = vector.broadcast %79 : vector<8x1xf32> to vector<8x8xf32>
    %81 = arith.subf %77, %80 : vector<8x8xf32>
    %82 = math.exp %81 : vector<8x8xf32>
    %cst_50 = arith.constant dense<0.000000e+00> : vector<8xf32>
    %83 = vector.multi_reduction <add>, %82, %cst_50 [1] : vector<8x8xf32> to vector<8xf32>
    %84 = vector.shape_cast %83 : vector<8xf32> to vector<8x1xf32>
    %cst_51 = arith.constant dense<0.000000e+00> : vector<8x8xf32>
    %85 = tpu.matmul %82, %76, %cst_51 {dimension_numbers = #tpu.dot_dimension_numbers<[1], [0], [0], [1], [0, 0, 1, 1], [], []>} : vector<8x8xf32>, vector<8x8xf32>, vector<8x8xf32> -> vector<8x8xf32>
    %86 = tpu.reciprocal %84 {approx = true} : vector<8x1xf32> -> vector<8x1xf32>
    %87 = vector.broadcast %86 : vector<8x1xf32> to vector<8x8xf32>
    %88 = arith.mulf %85, %87 : vector<8x8xf32>
    %c0_52 = arith.constant 0 : index
    %c0_53 = arith.constant 0 : index
    %c24_54 = arith.constant 24 : index
    %89 = vector.load %arg6[%c0_52, %c0_53, %c24_54] : memref<1x8x32xf32, #tpu.memory_space<vmem>>, vector<1x8x8xf32>
    %90 = vector.shape_cast %89 : vector<1x8x8xf32> to vector<8x8xf32>
    %91 = vector.shape_cast %88 : vector<8x8xf32> to vector<1x8x8xf32>
    tpu.vector_store %arg6[%c0_52, %c0_53, %c24_54], %91 {strides = array<i32>} : memref<1x8x32xf32, #tpu.memory_space<vmem>>, vector<1x8x8xf32>,
    return
  }
  func.func @transform_0(%arg0: i32, %arg1: i32, %arg2: i32) -> (i32, i32, i32) {
    %c0_i32 = arith.constant 0 : i32
    %c0_i32_0 = arith.constant 0 : i32
    return %arg0, %arg2, %c0_i32 : i32, i32, i32
  }
  func.func @transform_1(%arg0: i32, %arg1: i32, %arg2: i32) -> (i32, i32, i32) {
    %c0_i32 = arith.constant 0 : i32
    %c0_i32_0 = arith.constant 0 : i32
    %c0_i32_1 = arith.constant 0 : i32
    return %arg0, %c0_i32, %c0_i32_0 : i32, i32, i32
  }
  func.func @transform_2(%arg0: i32, %arg1: i32, %arg2: i32) -> (i32, i32, i32) {
    %c0_i32 = arith.constant 0 : i32
    %c0_i32_0 = arith.constant 0 : i32
    %c0_i32_1 = arith.constant 0 : i32
    return %arg0, %c0_i32, %c0_i32_0 : i32, i32, i32
  }
  func.func @transform_3(%arg0: i32, %arg1: i32, %arg2: i32) -> (i32, i32, i32) {
    %c0_i32 = arith.constant 0 : i32
    return %arg0, %arg2, %arg1 : i32, i32, i32
  }
}

</mosaic_0001>

<bundles_post_ra>
// kernel: attention_forward.5
= control target key start
LH: loop header
LB: loop body
LE: loop exit
PB: predicated region body
PF: predicated region fallthrough
CT: control target
= control target key end

     0   :  { %vm19_vm0 = vcmask 261120   ;;  %v204_v6 = vmov 0.0   ;;  %s269_s0 = inlined_call_operand.vmem [shape: f32[16,32], index: 0, kind: input, shape index: {}]   ;;  %s270_s1 = inlined_call_operand.vmem [shape: f32[32,32], index: 1, kind: input, shape index: {}]   ;;  %s271_s2 = inlined_call_operand.vmem [shape: f32[1,32], index: 2, kind: input, shape index: {}]   ;;  %s272_s3 = inlined_call_operand.hbm [shape: f32[16,32], index: 3, kind: output, shape index: {}]  }
   0x1   :  { %v26_v0 = vld [vmem:[%s270_s1] sm:$0xff]  ;;  %v27_v1 = vld [vmem:[%s270_s1 + $0x8] sm:$0xff]  ;;  %v28_v2 = vld [vmem:[%s270_s1 + $0x10] sm:$0xff]  ;;  %21 = vst.msk [vmem:[#allocation2 + $0x8] sm:$0xff] %vm19_vm0, %v204_v6 }
   0x2   :  { %v168_v3 = vpack.c.bf16 %v27_v1, %v26_v0  ;;  %v29_v4 = vld [vmem:[%s270_s1 + $0x18] sm:$0xff]  ;;  %v24_v5 = vld [vmem:[%s269_s0] sm:$0xff]  ;;  %20 = vst.msk [vmem:[#allocation2] sm:$0xff] %vm19_vm0, %v204_v6 }
   0x3   :  { %v172_v7 = vpack.c.bf16 %v29_v4, %v28_v2  ;;  %165 = vmatprep.mubr.msk.f32.mxu0 %vm19_vm0, %v24_v5 }
   0x4   :  { %8 = vsyncpa [#allocation4], 0  ;;  %169 = vmatprep.subr.bf16.mxu0 %v168_v3  ;;  %v25_v8 = vld [vmem:[%s269_s0 + $0x8] sm:$0xff]  ;;  %v150_v15 = vld [vmem:[%s271_s2] ss:$0 sm:$0xff]  ;;  %s205_s25 = smov [#allocation3]  }
   0x5   :  { %171 = vmatpush3.bf16.msra.mxu0 %v168_v3  ;;  %s137_s26 = sshll.u32 %s205_s25, 4  ;;  %s138_s26 = int_to_ptr.vmem [resolvable:$true] %s137_s26 }
   0x6   :  { %173 = vmatprep.subr.bf16.mxu0 %v172_v7  ;;  %s180_s0 = scalar_lea.vmem %s138_s26, 256  ;;  %p185_p1 = scmp.lt.s32.totalorder %s138_s26, %s138_s26 }
   0x7   :  { %p181_p0 = scmp.ne.s32.totalorder %s138_s26, %s180_s0  ;;  %p186_p2 = scmp.lt.s32.totalorder %s180_s0, %s180_s0 }
   0x8   :  { %v23_v9 = vld [vmem:[#allocation2 + $0x8] sm:$0xff] }
   0x9   :  { %175 = vmatpush3.bf16.msra.mxu0 %v172_v7  ;;  %v22_v10 = vld [vmem:[#allocation2] sm:$0xff]  ;;  %p187_p3 = por %p186_p2, %p185_p1 }
   0xb   :  { %p188_p4 = pnand %p187_p3, %p181_p0 }
   0xc   :  { %166 = vmatmul.mubr.msk.f32.vlgmr.msra.gmra.mrb[0].mxu0 %vm19_vm0, %v25_v8 }
  0xdf   :  { %v167_v11 = vpop.f32.mrb[0].mxu0 }
  0xe0   :  { %v113_v12 = vadd.f32 %v167_v11, %v23_v9  ;;  %v103_v13 = vpop.f32.mrb[1].mxu0 }
  0xe1   :  { %v112_v14 = vadd.f32 %v103_v13, %v22_v10 }
  0xe2   :  { %115 = vst.msk [vmem:[#allocation2 + $0x8] sm:$0xff] %vm19_vm0, %v113_v12 }
  0xe3   :  { %114 = vst.msk [vmem:[#allocation2] sm:$0xff] %vm19_vm0, %v112_v14 }
  0xe9   :  { %v120_v16 = vld [vmem:[#allocation2 + $0x8] sm:$0xff] }
  0xea   :  { %v119_v17 = vld [vmem:[#allocation2] sm:$0xff]  ;;  %v129_v18 = vadd.f32 %v150_v15, %v120_v16 }
  0xeb   :  { %v128_v19 = vadd.f32 %v150_v15, %v119_v17 }
  0xec   :  { %131 = vst.msk [vmem:[#allocation3 + $0x8] sm:$0xff] %vm19_vm0, %v129_v18 }
  0xed   :  { %130 = vst.msk [vmem:[#allocation3] sm:$0xff] %vm19_vm0, %v128_v19 }
  0xee   :  { %191 = shalt.err (!%p188_p4)
}
  0xef   :  { %s192_s28 = scalar_lea.hbm %s272_s3, 256 }
  0xf0   :  { %p193_p5 = scmp.ne.s32.totalorder %s272_s3, %s192_s28  ;;  %p196_p6 = scmp.lt.u32.totalorder %s192_s28, %s272_s3 }
  0xf2   :  { %p198_p7 = pnand %p196_p6, %p193_p5 }
  0xf4   :  { %201 = shalt.err (!%p198_p7)
}
  0xf5   :  { %s206_s6 = smov 128   ;;  %s207_s7 = smov 8  }
  0xf6   :  { %143 = dma.vmem_to_hbm [thread:$0]  %s138_s26, 256, %s272_s3, [#allocation4], %s206_s6, %s206_s6, %s207_s7  }
  0xf7   :  { %202 = dma.done.wait [#allocation4], 256  }
  0xf8   :  { %203 = vsyncadd [#allocation4], 4294967040 }
  0xf9   :  { %147 = vsyncpa [#allocation4], 1 }

// kernel: attention_forward.3
= control target key start
LH: loop header
LB: loop body
LE: loop exit
PB: predicated region body
PF: predicated region fallthrough
CT: control target
= control target key end

     0   :  { %7 = vsyncpa [#allocation4], 0  ;;  %s290_s0 = inlined_call_operand.hbm [shape: f32[16,32], index: 0, kind: input, shape index: {}]   ;;  %s291_s1 = inlined_call_operand.hbm [shape: f32[32,96], index: 1, kind: input, shape index: {}]   ;;  %s292_s2 = inlined_call_operand.vmem [shape: f32[16,96], index: 2, kind: output, shape index: {}]  }
   0x1   :  { %8 = vsyncpa [#allocation6], 0  ;;  %s234_s9 = smov [#allocation3]   ;;  %s186_s13 = scalar_lea.hbm %s290_s0, 256 }
   0x2   :  { %s14_s10 = sshll.u32 %s234_s9, 4  ;;  %p187_p0 = scmp.ne.s32.totalorder %s290_s0, %s186_s13  ;;  %s15_s10 = int_to_ptr.vmem [resolvable:$true] %s14_s10 }
   0x3   :  { %p190_p1 = scmp.lt.u32.totalorder %s186_s13, %s290_s0 }
   0x5   :  { %p192_p2 = pnand %p190_p1, %p187_p0 }
   0x7   :  { %195 = shalt.err (!%p192_p2)
}
   0x8   :  { %s196_s18 = scalar_lea.vmem %s15_s10, 256  ;;  %p201_p4 = scmp.lt.s32.totalorder %s15_s10, %s15_s10 }
   0x9   :  { %p197_p3 = scmp.ne.s32.totalorder %s15_s10, %s196_s18  ;;  %p202_p5 = scmp.lt.s32.totalorder %s196_s18, %s196_s18 }
   0xb   :  { %p203_p6 = por %p202_p5, %p201_p4 }
   0xd   :  { %p204_p7 = pnand %p203_p6, %p197_p3 }
   0xf   :  { %207 = shalt.err (!%p204_p7)
}
  0x10   :  { %s235_s19 = smov 128   ;;  %s236_s20 = smov 8  }
  0x11   :  { %20 = dma.hbm_to_vmem [thread:$0]  %s290_s0, 256, %s15_s10, [#allocation4], %s235_s19, %s235_s19, %s236_s20  }
  0x12   :  { %s237_s23 = smov [#allocation5]   ;;  %s208_s27 = scalar_lea.hbm %s291_s1, 512 }
  0x13   :  { %s26_s24 = sshll.u32 %s237_s23, 4  ;;  %p209_p8 = scmp.ne.s32.totalorder %s291_s1, %s208_s27  ;;  %s27_s24 = int_to_ptr.vmem [resolvable:$true] %s26_s24 }
  0x14   :  { %p212_p9 = scmp.lt.u32.totalorder %s208_s27, %s291_s1 }
  0x16   :  { %p214_p10 = pnand %p212_p9, %p209_p8 }
  0x18   :  { %217 = shalt.err (!%p214_p10)
}
  0x19   :  { %s218_s4 = scalar_lea.vmem %s27_s24, 512  ;;  %p223_p12 = scmp.lt.s32.totalorder %s27_s24, %s27_s24 }
  0x1a   :  { %p219_p11 = scmp.ne.s32.totalorder %s27_s24, %s218_s4  ;;  %p224_p13 = scmp.lt.s32.totalorder %s218_s4, %s218_s4 }
  0x1c   :  { %p225_p0 = por %p224_p13, %p223_p12 }
  0x1e   :  { %p226_p1 = pnand %p225_p0, %p219_p11 }
  0x20   :  { %229 = shalt.err (!%p226_p1)
}
  0x21   :  { %32 = dma.hbm_to_vmem [thread:$0]  %s291_s1, 512, %s27_s24, [#allocation6], %s235_s19, %s235_s19, %s236_s20  }
  0x22   :  { %230 = dma.done.wait [#allocation4], 256  }
  0x23   :  { %231 = vsyncadd [#allocation4], 4294967040 }
  0x24   :  { %232 = dma.done.wait [#allocation6], 512  }
  0x25   :  { %233 = vsyncadd [#allocation6], 4294966784  ;;  %vm43_vm0 = vcmask 785408   ;;  %v238_v0 = vmov 0.0   ;;  %vm54_vm1 = vcmask 261120   ;;  %v50_v1 = vld [vmem:[#allocation5] sm:$0xff] }
  0x26   :  { %45 = vst.msk [vmem:[#allocation2 + $0x8] sm:$0xff] %vm43_vm0, %v238_v0  ;;  %44 = vst.msk [vmem:[#allocation2] sm:$0xff] %vm43_vm0, %v238_v0  ;;  %v51_v2 = vld [vmem:[#allocation5 + $0x8] sm:$0xff]  ;;  %v52_v3 = vld [vmem:[#allocation5 + $0x10] sm:$0xff] }
  0x27   :  { %v173_v4 = vpack.c.bf16 %v51_v2, %v50_v1  ;;  %v53_v5 = vld [vmem:[#allocation5 + $0x18] sm:$0xff]  ;;  %v48_v6 = vld [vmem:[#allocation3] sm:$0xff] }
  0x28   :  { %v177_v7 = vpack.c.bf16 %v53_v5, %v52_v3  ;;  %170 = vmatprep.mubr.msk.f32.mxu0 %vm54_vm1, %v48_v6  ;;  %v49_v8 = vld [vmem:[#allocation3 + $0x8] sm:$0xff] }
  0x29   :  { %174 = vmatprep.subr.bf16.mxu0 %v173_v4 }
  0x2a   :  { %176 = vmatpush3.bf16.msra.mxu0 %v173_v4 }
  0x2b   :  { %178 = vmatprep.subr.bf16.mxu0 %v177_v7 }
  0x2d   :  { %v47_v9 = vld [vmem:[#allocation2 + $0x8] sm:$0xff]  ;;  %v46_v10 = vld [vmem:[#allocation2] sm:$0xff] }
  0x2e   :  { %180 = vmatpush3.bf16.msra.mxu0 %v177_v7 }
  0x31   :  { %171 = vmatmul.mubr.msk.f32.vlgmr.msra.gmra.mrb[0].mxu0 %vm54_vm1, %v49_v8 }
 0x104   :  { %v172_v11 = vpop.f32.mrb[0].mxu0 }
 0x105   :  { %v137_v12 = vadd.f32 %v172_v11, %v47_v9  ;;  %v127_v13 = vpop.f32.mrb[1].mxu0 }
 0x106   :  { %v136_v14 = vadd.f32 %v127_v13, %v46_v10 }
 0x107   :  { %140 = vst.msk [vmem:[#allocation2 + $0x8] sm:$0xff] %vm43_vm0, %v137_v12 }
 0x108   :  { %139 = vst.msk [vmem:[#allocation2] sm:$0xff] %vm43_vm0, %v136_v14 }
 0x10e   :  { %v145_v15 = vld [vmem:[#allocation2 + $0x8] sm:$0xff] }
 0x10f   :  { %147 = vst.msk [vmem:[%s292_s2 + $0x8] sm:$0xff] %vm43_vm0, %v145_v15  ;;  %v144_v16 = vld [vmem:[#allocation2] sm:$0xff] }
 0x110   :  { %146 = vst.msk [vmem:[%s292_s2] sm:$0xff] %vm43_vm0, %v144_v16 }
 0x111   :  { %152 = vsyncpa [#allocation4], 1 }
 0x112   :  { %153 = vsyncpa [#allocation6], 1 }

// kernel: attention_forward.4
= control target key start
LH: loop header
LB: loop body
LE: loop exit
PB: predicated region body
PF: predicated region fallthrough
CT: control target
= control target key end

     0   :  { %s1258_s12 = smov 0   ;;  %s1260_s13 = smov 0   ;;  %s1364_s0 = inlined_call_operand.vmem [shape: f32[2,8,96], index: 0, kind: input, shape index: {}, may-alias: {0,1,2}]   ;;  %s1365_s1 = inlined_call_operand.vmem [shape: f32[2,8,96], index: 1, kind: input, shape index: {}, may-alias: {0,1,2}]   ;;  %s1366_s2 = inlined_call_operand.vmem [shape: f32[2,8,96], index: 2, kind: input, shape index: {}, may-alias: {0,1,2}]   ;;  %s1367_s3 = inlined_call_operand.vmem [shape: f32[2,8,32], index: 3, kind: output, shape index: {}]  }
   0x1   :  { %s1262_s14 = smov 0  }
   0x2 LB: > { %s32_s15 = sadd.s32 1, %s1216_s13  ;;  %p1067_p0 = scmp.ge.s32.totalorder %s1220_s14, 1  ;;  %s1220_s14 = sphi %s1262_s14, %s13_s14   ;;  %s1216_s13 = sphi %s1260_s13, %s1369_s13   ;;  %s1212_s12 = sphi %s1258_s12, %s1368_s12  }
   0x3   : > { %p34_p1 = scmp.ge.s32.totalorder %s32_s15, 2  ;;  %p182_p2 = scmp.lt.s32.totalorder %s1220_s14, 3 }
   0x5   : > { %s1371_s15 = smov (%p34_p1, %s32_s15), 0  ;;  %p183_p3 = pnand %p1067_p0, %p182_p2 }
   0x6   : > { %p221_p4 = scmp.lt.s32.totalorder (!%p183_p3), %s1212_s12, 1  ;;  %v1222_v0 = vmov (!%p183_p3), 0.0   ;;  %vm1223_vm0 = vmmov (!%p183_p3), 0   ;;  %s1224_s20 = smov (!%p183_p3), 96   ;;  %vm253_vm1 = vcmask (!%p183_p3), 64512   ;;  %vm594_vm2 = vcmask (!%p183_p3), 130112  }
   0x7   : > { %186 = sbr.rel (%p183_p3) target bundleno = 1218 (0x4c2), region = 32  ;;  %1102 = vmatprep.subr.mxu0 (!%p183_p3), %v1222_v0  ;;  %1104 = vmatprep.mubr.msk.f32.mxu0 (!%p183_p3), %vm1223_vm0, %v1222_v0  ;;  %s1225_s27 = smov (!%p183_p3), 64   ;;  %vm772_vm3 = vcmask (!%p183_p3), 195712   ;;  %vm950_vm4 = vcmask (!%p183_p3), 261312  }
   0x8   : > { %1107 = vmatprep.subr.mxu1 (!%p183_p3), %v1222_v0  ;;  %1109 = vmatprep.mubr.msk.f32.mxu1 (!%p183_p3), %vm1223_vm0, %v1222_v0  ;;  %s1226_s28 = smov (!%p183_p3), 88   ;;  %s1227_s29 = smov (!%p183_p3), 120  }
   0x9   : > { %s1228_s30 = smov (!%p183_p3), 80   ;;  %s1229_s4 = smov (!%p183_p3), 112  }
   0xa   : > { %s1230_s5 = smov (!%p183_p3), 72   ;;  %s1231_s6 = smov (!%p183_p3), 104  }
   0xb   : > { %s1232_s7 = smov (!%p183_p3), 56   ;;  %s1233_s8 = smov (!%p183_p3), 48  }
   0xc   : > { %s1234_s9 = smov (!%p183_p3), 40   ;;  %s1235_s17 = smov (!%p183_p3), 8  }
   0xd   : > { %s1237_s18 = smov (!%p183_p3), 24  }
   0xe   : > { %s1373_s12 = smov (!%p221_p4, %s1212_s12), 1 }
   0xf   : > { %s1282_s16 = sshll.u32 %s1373_s12, 3 }
  0x10   : > { %s231_s19 = scalar_lea.vmem %s1365_s1, %s1282_s16  ;;  %s227_s23 = scalar_lea.vmem %s1364_s0, %s1282_s16 }
  0x11   : > { %v248_v1 = vld [vmem:[%s231_s19] sm:$0xff]  ;;  %s235_s26 = scalar_lea.vmem %s1366_s2, %s1282_s16  ;;  %s1348_s12 = scalar_lea.vmem %s1367_s3, %s1282_s16 }
  0x12   : > { %251 = vrot.lane.b32.xlu0 %v248_v1, %s1224_s20  ;;  %v246_v2 = vld [vmem:[%s227_s23] sm:$0xff]  ;;  %s1236_s16 = smov 16  }
  0x13   : > { %v247_v4 = vmul.f32 0.35355338, %v246_v2  ;;  %v1301_v5 = vld [vmem:[%s235_s26] sm:$0xff] }
  0x14   : > { %339 = vrot.lane.b32.xlu1 %v1301_v5, %s1225_s27 }
  0x18   : > { %426 = vrot.lane.b32.xlu1 %v248_v1, %s1226_s28 }
  0x1c   : > { %423 = vrot.lane.b32.xlu1 %v247_v4, %s1227_s29 }
  0x20   : > { %604 = vrot.lane.b32.xlu1 %v248_v1, %s1228_s30 }
  0x24   : > { %601 = vrot.lane.b32.xlu1 %v247_v4, %s1229_s4 }
  0x28   : > { %782 = vrot.lane.b32.xlu1 %v248_v1, %s1230_s5 }
  0x2c   : > { %779 = vrot.lane.b32.xlu1 %v247_v4, %s1231_s6 }
  0x84   : > { %v252_v3 = vpop.permute.xlu0 %251 }
  0x85   : > { %1103 = vmatpush3.xpose.msk.msra.mxu0 %vm253_vm1, %v252_v3 }
  0x86   : > { %1117 = vmatprep.subr.mxu0 %v1222_v0  ;;  %v340_v9 = vpop.permute.xlu1 %339 }
  0x87   : > { %1108 = vmatpush3.msra.mxu1 %v340_v9 }
  0x88   : > { %1105 = vmatmul.mubr.msk.f32.vlgmr.msra.gmra.mrb[0].mxu0 %vm253_vm1, %v247_v4  ;;  %1112 = vmatprep.subr.mxu1 %v1222_v0 }
  0x89   : > { %1119 = vmatprep.mubr.msk.f32.mxu0 %vm1223_vm0, %v1222_v0 }
  0x8a   : > { %v427_v10 = vpop.permute.xlu1 %426 }
  0x8e   : > { %v424_v13 = vpop.permute.xlu1 %423 }
  0x92   : > { %v605_v15 = vpop.permute.xlu1 %604 }
  0x96   : > { %v602_v16 = vpop.permute.xlu1 %601 }
  0x9a   : > { %v783_v18 = vpop.permute.xlu1 %782 }
  0x9e   : > { %v780_v19 = vpop.permute.xlu1 %779 }
 0x15b   : > { %v325_v6 = vpop.f32.mrb[0].mxu0 }
 0x15c   : > { %v1106_v7 = vpop.f32.mrb[1].mxu0  ;;  %v329_v8 = vsel %vm253_vm1, %v325_v6, -inf }
 0x15d   : > { %330 = vmax.xlane.f32.xlu0 %v329_v8 }
 0x173   : > { %512 = vrot.lane.b32.xlu0 %v1301_v5, %s1232_s7 }
 0x1ea   : > { %v331_v11 = vpop.xlane.xlu0 %330 }
 0x1eb   : > { %v332_v12 = vsub.f32 %v325_v6, %v331_v11 }
 0x1ed   : > { %v333_v14 = vmul.f32 1.442695, %v332_v12 }
 0x1ee   : > { %v513_v20 = vpop.permute.xlu0 %512 }
 0x1ef   : > { %1182 = vpow2.f32 %v333_v14  ;;  %1118 = vmatpush3.msra.mxu0 %v513_v20 }
 0x1f0   : > { %1127 = vmatprep.subr.mxu0 %v1222_v0 }
 0x1f9   : > { %v1307_v17 = vpop.eup %1182 }
 0x1fa   : > { %1110 = vmatmul.mubr.msk.f32.vlgmr.msra.gmra.mrb[0].mxu1 %vm253_vm1, %v1307_v17  ;;  %v335_v49 = vsel %vm253_vm1, %v1307_v17, 0.0 }
 0x1fb   : > { %1113 = vmatpush3.xpose.msk.msra.mxu1 %vm253_vm1, %v427_v10  ;;  %1114 = vmatprep.mubr.msk.f32.mxu1 %vm1223_vm0, %v1222_v0 }
 0x1fc   : > { %1122 = vmatprep.subr.mxu1 %v1222_v0 }
 0x1fe   : > { %1115 = vmatmul.mubr.msk.f32.vlgmr.msra.gmra.mrb[2].mxu1 %vm253_vm1, %v424_v13 }
 0x1ff   : > { %1123 = vmatpush3.xpose.msk.msra.mxu1 %vm253_vm1, %v605_v15  ;;  %1124 = vmatprep.mubr.msk.f32.mxu1 %vm1223_vm0, %v1222_v0 }
 0x200   : > { %1132 = vmatprep.subr.mxu1 %v1222_v0 }
 0x202   : > { %1125 = vmatmul.mubr.msk.f32.vlgmr.msra.gmra.mrb[4].mxu1 %vm253_vm1, %v602_v16 }
 0x203   : > { %1133 = vmatpush3.xpose.msk.msra.mxu1 %vm253_vm1, %v783_v18  ;;  %1134 = vmatprep.mubr.msk.f32.mxu1 %vm1223_vm0, %v1222_v0 }
 0x206   : > { %1135 = vmatmul.mubr.msk.f32.vlgmr.msra.gmra.mrb[6].mxu1 %vm253_vm1, %v780_v19 }
 0x2cd   : > { %v411_v21 = vpop.f32.mrb[0].mxu1 }
 0x2ce   : > { %v1111_v22 = vpop.f32.mrb[1].mxu1 }
 0x2d1   : > { %v498_v23 = vpop.f32.mrb[2].mxu1 }
 0x2d2   : > { %v1116_v24 = vpop.f32.mrb[3].mxu1  ;;  %v502_v25 = vsel %vm253_vm1, %v498_v23, -inf }
 0x2d3   : > { %503 = vmax.xlane.f32.xlu1 %v502_v25 }
 0x2d5   : > { %v676_v26 = vpop.f32.mrb[4].mxu1 }
 0x2d6   : > { %v1126_v27 = vpop.f32.mrb[5].mxu1  ;;  %v680_v28 = vsel %vm253_vm1, %v676_v26, -inf }
 0x2d7   : > { %681 = vmax.xlane.f32.xlu0 %v680_v28 }
 0x2d9   : > { %v854_v29 = vpop.f32.mrb[6].mxu1 }
 0x2da   : > { %v1136_v30 = vpop.f32.mrb[7].mxu1  ;;  %v858_v31 = vsel %vm253_vm1, %v854_v29, -inf }
 0x2db   : > { %859 = vmax.xlane.f32.xlu0 %v858_v31 }
 0x2e4   : > { %690 = vrot.lane.b32.xlu1 %v1301_v5, %s1233_s8 }
 0x2f1   : > { %868 = vrot.lane.b32.xlu0 %v1301_v5, %s1234_s9 }
 0x360   : > { %v504_v32 = vpop.xlane.xlu1 %503 }
 0x361   : > { %v505_v33 = vsub.f32 %v498_v23, %v504_v32 }
 0x363   : > { %v506_v34 = vmul.f32 1.442695, %v505_v33 }
 0x364   : > { %v682_v35 = vpop.xlane.xlu0 %681  ;;  %v691_v41 = vpop.permute.xlu1 %690 }
 0x365   : > { %1184 = vpow2.f32 %v506_v34  ;;  %v683_v36 = vsub.f32 %v676_v26, %v682_v35 }
 0x367   : > { %v684_v37 = vmul.f32 1.442695, %v683_v36 }
 0x368   : > { %v860_v38 = vpop.xlane.xlu0 %859 }
 0x369   : > { %1186 = vpow2.f32 %v684_v37  ;;  %v861_v39 = vsub.f32 %v854_v29, %v860_v38 }
 0x36b   : > { %v862_v40 = vmul.f32 1.442695, %v861_v39 }
 0x36c   : > { %v869_v44 = vpop.permute.xlu0 %868 }
 0x36d   : > { %1188 = vpow2.f32 %v862_v40 }
 0x36f   : > { %v1185_v42 = vpop.eup %1184 }
 0x370   : > { %1120 = vmatmul.mubr.msk.f32.vlgmr.msra.gmra.mrb[2].mxu0 %vm253_vm1, %v1185_v42  ;;  %v508_v43 = vsel %vm253_vm1, %v1185_v42, 0.0 }
 0x371   : > { %1128 = vmatpush3.msra.mxu0 %v691_v41  ;;  %509 = vadd.xlane.f32.xlu0 %v508_v43 }
 0x372   : > { %1129 = vmatprep.mubr.msk.f32.mxu0 %vm1223_vm0, %v1222_v0  ;;  %1137 = vmatprep.subr.mxu0 %v1222_v0 }
 0x373   : > { %v1187_v45 = vpop.eup %1186 }
 0x374   : > { %1130 = vmatmul.mubr.msk.f32.vlgmr.msra.gmra.mrb[4].mxu0 %vm253_vm1, %v1187_v45  ;;  %v686_v46 = vsel %vm253_vm1, %v1187_v45, 0.0 }
 0x375   : > { %1138 = vmatpush3.msra.mxu0 %v869_v44  ;;  %687 = vadd.xlane.f32.xlu1 %v686_v46 }
 0x376   : > { %1139 = vmatprep.mubr.msk.f32.mxu0 %vm1223_vm0, %v1222_v0 }
 0x377   : > { %v1189_v47 = vpop.eup %1188 }
 0x378   : > { %1140 = vmatmul.mubr.msk.f32.vlgmr.msra.gmra.mrb[6].mxu0 %vm253_vm1, %v1189_v47  ;;  %v864_v48 = vsel %vm253_vm1, %v1189_v47, 0.0 }
 0x379   : > { %865 = vadd.xlane.f32.xlu0 %v864_v48 }
 0x37d   : > { %336 = vadd.xlane.f32.xlu0 %v335_v49 }
 0x3fe   : > { %v510_v50 = vpop.xlane.xlu0 %509 }
 0x402   : > { %v688_v55 = vpop.xlane.xlu1 %687 }
 0x406   : > { %v866_v51 = vpop.xlane.xlu0 %865 }
 0x40a   : > { %v337_v52 = vpop.xlane.xlu0 %336 }
 0x40b   : > { %1190 = vrcp.f32 %v337_v52 }
 0x40c   : > { %1192 = vrcp.f32 %v510_v50 }
 0x40d   : > { %1194 = vrcp.f32 %v688_v55 }
 0x40e   : > { %1196 = vrcp.f32 %v866_v51 }
 0x415   : > { %v1191_v53 = vpop.eup %1190 }
 0x416   : > { %v416_v54 = vmul.f32 %v1191_v53, %v411_v21  ;;  %v1193_v56 = vpop.eup %1192 }
 0x417   : > { %v1195_v60 = vpop.eup %1194 }
 0x418   : > { %417 = vst.msk [vmem:[%s1348_s12] sm:$0xff] %vm253_vm1, %v416_v54  ;;  %v1197_v0 = vpop.eup %1196 }
 0x443   : > { %v584_v57 = vpop.f32.mrb[2].mxu0 }
 0x444   : > { %v589_v58 = vmul.f32 %v1193_v56, %v584_v57  ;;  %v1121_v59 = vpop.f32.mrb[3].mxu0 }
 0x446   : > { %591 = vrot.lane.b32.xlu0 %v589_v58, %s1235_s17 }
 0x447   : > { %v762_v61 = vpop.f32.mrb[4].mxu0 }
 0x448   : > { %v767_v62 = vmul.f32 %v1195_v60, %v762_v61  ;;  %v1131_v63 = vpop.f32.mrb[5].mxu0 }
 0x44a   : > { %769 = vrot.lane.b32.xlu1 %v767_v62, %s1236_s16 }
 0x44b   : > { %v940_v1 = vpop.f32.mrb[6].mxu0 }
 0x44c   : > { %v945_v2 = vmul.f32 %v1197_v0, %v940_v1  ;;  %v1141_v3 = vpop.f32.mrb[7].mxu0 }
 0x44e   : > { %947 = vrot.lane.b32.xlu0 %v945_v2, %s1237_s18 }
 0x4b8   : > { %v592_v4 = vpop.permute.xlu0 %591 }
 0x4b9   : > { %595 = vst.msk [vmem:[%s1348_s12] sm:$0xff] %vm594_vm2, %v592_v4 }
 0x4bc   : > { %v770_v5 = vpop.permute.xlu1 %769 }
 0x4bd   : > { %773 = vst.msk [vmem:[%s1348_s12] sm:$0xff] %vm772_vm3, %v770_v5 }
 0x4c0   : > { %v948_v6 = vpop.permute.xlu0 %947 }
 0x4c1   : > { %951 = vst.msk [vmem:[%s1348_s12] sm:$0xff] %vm950_vm4, %v948_v6 }
 0x4c2 PF: > { %s13_s14 = sadd.s32 1, %s1220_s14   ;;  %s1368_s12 = smov %s1216_s13 }
 0x4c3   : > { %p10_p5 = scmp.ge.s32.totalorder %s13_s14, 4   ;;  %s1369_s13 = smov %s1371_s15 }
 0x4c5   :  { %12 = sbr.rel (!%p10_p5) target bundleno = 2 (0x2), region = 68 }

</bundles_post_ra>
